<compile_context>
chip_gen: v7x
topology: tpu7x:2x2x1
jax: 0.10.0
libtpu: 0.0.40
codegen_flags: <defaults>
</compile_context>

<pallas_src>
import functools

import jax
import jax.numpy as jnp
from jax.experimental import pallas as pl
from jax.experimental.pallas import tpu as pltpu

EMBEDDING_SIZE = 10
HIDDEN_SIZE = 8
INPUT_SIZE = 4      # vocab size
NUM_CLASS = 4
NUM_LAYERS = 2      # hard-coded as two stacked RNN layers below


def _align8(n):
    return ((n + 7) // 8) * 8


# Row offsets of the packed (PACK_ROWS, HIDDEN_SIZE) parameter slab.
# Every section starts on an 8-sublane boundary so kernel-side static ref slices
# stay tile-aligned.
ROW_EMBW0 = 0                                    # (V, H)  emb @ Wih0 + b_ih0 + b_hh0
ROW_WHH0 = _align8(INPUT_SIZE)                   # (H, H)  Whh0^T
ROW_WIH1 = ROW_WHH0 + _align8(HIDDEN_SIZE)       # (H, H)  Wih1^T
ROW_WHH1 = ROW_WIH1 + _align8(HIDDEN_SIZE)       # (H, H)  Whh1^T
ROW_B1 = ROW_WHH1 + _align8(HIDDEN_SIZE)         # (1, H)  b_ih1 + b_hh1
ROW_WFC = ROW_B1 + 8                             # (H, H)  Wfc^T padded to H cols
ROW_BFC = ROW_WFC + _align8(HIDDEN_SIZE)         # (1, H)  b_fc padded to H cols
PACK_ROWS = ROW_BFC + 8


def rnn_kernel(ids_ref, p_ref, out_ref, xstage_ref, h1stage_ref, *, B, T):
    """ids_ref: (B, T) int32 token ids in SMEM.
    p_ref:      (PACK_ROWS, H) f32 packed parameters in VMEM.
    out_ref:    (B*T, NUM_CLASS) f32 logits, row = b*T + t (b-major, matches torch view).
    xstage_ref: (B*T, H) VMEM scratch, per-timestep input projections (t-major rows).
    h1stage_ref:(B*T, H) VMEM scratch, top-layer hidden states (b-major rows)."""
    f32 = jnp.float32
    H = HIDDEN_SIZE
    C = NUM_CLASS

    # ---- packed parameter views (static, 8-aligned row slices) ----
    whh0 = p_ref[ROW_WHH0:ROW_WHH0 + H, :]        # (H, H)
    wih1 = p_ref[ROW_WIH1:ROW_WIH1 + H, :]        # (H, H)
    whh1 = p_ref[ROW_WHH1:ROW_WHH1 + H, :]        # (H, H)
    b1 = p_ref[ROW_B1:ROW_B1 + 1, :]              # (1, H)
    wfc = p_ref[ROW_WFC:ROW_WFC + H, :]           # (H, H)  cols >= C are zero
    bfc = p_ref[ROW_BFC:ROW_BFC + 1, :]           # (1, H)  cols >= C are zero

    # ---- gather all timestep input projections into VMEM staging (t-major rows) ----
    # Row t*B + b  <-  embw0[ids[b, t]]  where embw0 already folds emb@Wih0 + b_ih0 + b_hh0.
    # Independent of the recurrent state -> completely off the critical path.
    # (Out-of-range token ids read other packed rows instead of erroring like PyTorch.)
    for t in range(T):
        for b in range(B):
            tok = ids_ref[b, t]
            xstage_ref[pl.ds(t * B + b, 1), :] = p_ref[pl.ds(ROW_EMBW0 + tok, 1), :]

    # hoisted bias broadcast (JAX does not CSE broadcast_in_dim inside the unrolled loop)
    b1b = jnp.broadcast_to(b1, (B, H))

    h0 = jnp.zeros((B, H), f32)
    h1 = jnp.zeros((B, H), f32)
    # T is small & static -> fully unrolled; the only dependent edge per step is
    # one MXU matmul + one tanh (layer-1's Whh1 term overlaps layer 0).
    for t in range(T):
        xp = xstage_ref[pl.ds(t * B, B), :]                       # (B, H) static load
        # layer-1 recurrent term: depends only on h1_{t-1} -> pipelines with layer 0.
        rec1 = jnp.dot(h1, whh1, preferred_element_type=f32) + b1b
        # layer 0: input projection + both biases pre-folded into xp.
        h0 = jnp.tanh(xp + jnp.dot(h0, whh0, preferred_element_type=f32))
        # layer 1: single dependent MXU op + tanh on the critical edge.
        h1 = jnp.tanh(jnp.dot(h0, wih1, preferred_element_type=f32) + rec1)
        # stage h1_t at its final b-major output rows (row = b*T + t).
        for b in range(B):
            h1stage_ref[pl.ds(b * T + t, 1), :] = h1[b:b + 1, :]

    # ---- batched FC + single store (rows already in b-major output order) ----
    hs = h1stage_ref[...]                                         # (B*T, H)
    y = jnp.dot(hs, wfc, preferred_element_type=f32) + bfc        # (B*T, H), cols >= C unused
    out_ref[...] = y[:, :C]


def pack_params(p):
    """Fold/concat the 11 small weight & bias tensors into one (PACK_ROWS, H) slab."""
    H, C, V = HIDDEN_SIZE, NUM_CLASS, INPUT_SIZE
    embw0 = p["emb"] @ p["wih0_T"] + p["bih0"] + p["bhh0"]        # (V, H)
    b1 = p["bih1"] + p["bhh1"]                                    # (1, H)
    packed = jnp.zeros((PACK_ROWS, H), jnp.float32)
    packed = packed.at[ROW_EMBW0:ROW_EMBW0 + V, :].set(embw0)
    packed = packed.at[ROW_WHH0:ROW_WHH0 + H, :].set(p["whh0_T"])
    packed = packed.at[ROW_WIH1:ROW_WIH1 + H, :].set(p["wih1_T"])
    packed = packed.at[ROW_WHH1:ROW_WHH1 + H, :].set(p["whh1_T"])
    packed = packed.at[ROW_B1:ROW_B1 + 1, :].set(b1)
    packed = packed.at[ROW_WFC:ROW_WFC + H, :C].set(p["wfc_T"])
    packed = packed.at[ROW_BFC:ROW_BFC + 1, :C].set(p["bfc"])
    return packed


def rnn_model_forward(x, packed_params):
    """x: (B, T) int32 token ids (batch_first). Returns (B*T, NUM_CLASS) f32 logits,
    row = b*T + t, exactly matching the PyTorch module's x.view(-1, num_class).
    No layout ops around the pallas_call."""
    B, T = x.shape
    N = B * T
    H = HIDDEN_SIZE
    kernel = functools.partial(rnn_kernel, B=B, T=T)
    cost = pl.CostEstimate(
        flops=2 * T * B * 3 * H * H + 2 * N * H * H,     # 3 recurrent dots/step + batched FC
        transcendentals=2 * T * B * H,                   # two tanh(B,H) per step
        bytes_accessed=x.size * 4 + packed_params.size * 4 + N * NUM_CLASS * 4,
    )
    return pl.pallas_call(
        kernel,
        out_shape=jax.ShapeDtypeStruct((N, NUM_CLASS), jnp.float32),
        in_specs=[pl.BlockSpec(memory_space=pltpu.MemorySpace.SMEM),   # token ids (scalars)
                  pl.BlockSpec(memory_space=pltpu.MemorySpace.VMEM)],  # packed params
        out_specs=pl.BlockSpec(memory_space=pltpu.MemorySpace.VMEM),
        scratch_shapes=[pltpu.VMEM((N, H), jnp.float32),   # xproj staging (t-major rows)
                        pltpu.VMEM((N, H), jnp.float32)],  # h1 staging (b-major rows)
        cost_estimate=cost,
    )(x.astype(jnp.int32), packed_params)


def init_params(key):
    ks = jax.random.split(key, 12)
    u = lambda k, shape, scale: jax.random.uniform(
        k, shape, jnp.float32, minval=-scale, maxval=scale)
    sh = 1.0 / (HIDDEN_SIZE ** 0.5)
    sc = 1.0 / (HIDDEN_SIZE ** 0.5)
    return {
        # Embedding ~ N(0,1) like PyTorch nn.Embedding default init.
        "emb": jax.random.normal(ks[0], (INPUT_SIZE, EMBEDDING_SIZE), jnp.float32),
        # RNN layer 0 (weights stored pre-transposed so the math is x @ W)
        "wih0_T": u(ks[1], (EMBEDDING_SIZE, HIDDEN_SIZE), sh),
        "whh0_T": u(ks[2], (HIDDEN_SIZE, HIDDEN_SIZE), sh),
        "bih0": u(ks[3], (1, HIDDEN_SIZE), sh),
        "bhh0": u(ks[4], (1, HIDDEN_SIZE), sh),
        # RNN layer 1
        "wih1_T": u(ks[5], (HIDDEN_SIZE, HIDDEN_SIZE), sh),
        "whh1_T": u(ks[6], (HIDDEN_SIZE, HIDDEN_SIZE), sh),
        "bih1": u(ks[7], (1, HIDDEN_SIZE), sh),
        "bhh1": u(ks[8], (1, HIDDEN_SIZE), sh),
        # FC
        "wfc_T": u(ks[9], (HIDDEN_SIZE, NUM_CLASS), sc),
        "bfc": u(ks[10], (1, NUM_CLASS), sc),
    }


def reference_forward(x, params):
    """Pure-JAX reference of the original (unfused) math. Row order = b*T + t."""
    B, T = x.shape
    emb = params["emb"][x]                      # (B, T, E)
    h0 = jnp.zeros((B, HIDDEN_SIZE), jnp.float32)
    h1 = jnp.zeros((B, HIDDEN_SIZE), jnp.float32)
    outs = []
    for t in range(T):
        x_t = emb[:, t, :]
        h0 = jnp.tanh(x_t @ params["wih0_T"] + params["bih0"]
                      + h0 @ params["whh0_T"] + params["bhh0"])
        h1 = jnp.tanh(h0 @ params["wih1_T"] + params["bih1"]
                      + h1 @ params["whh1_T"] + params["bhh1"])
        outs.append(h1 @ params["wfc_T"] + params["bfc"])
    y = jnp.stack(outs, axis=1)                 # (B, T, C)
    return y.reshape(B * T, NUM_CLASS)


if __name__ == "__main__":
    key = jax.random.PRNGKey(0)
    pkey, xkey = jax.random.split(key)
    params = init_params(pkey)
    packed = pack_params(params)

    B, T = 2, 8
    x = jax.random.randint(xkey, (B, T), 0, INPUT_SIZE, dtype=jnp.int32)

    out = jax.block_until_ready(rnn_model_forward(x, packed))

    ref = reference_forward(x, params)
    assert out.shape == (B * T, NUM_CLASS)
    assert jnp.allclose(out, ref, atol=1e-5, rtol=1e-5), float(jnp.max(jnp.abs(out - ref)))

    print("KERNEL_OK")
</pallas_src>

<mosaic_0001>
module attributes {stable_mosaic.version = 11 : i64} {
  func.func @rnn_kernel(%arg0: memref<2x8xi32, #tpu.memory_space<smem>>, %arg1: memref<56x8xf32, #tpu.memory_space<vmem>>, %arg2: memref<16x4xf32, #tpu.memory_space<vmem>>, %arg3: memref<16x8xf32, #tpu.memory_space<vmem>>, %arg4: memref<16x8xf32, #tpu.memory_space<vmem>>) attributes {dimension_semantics = [], scalar_prefetch = 0 : i64, scratch_operands = 2 : i64, tpu.core_type = #tpu.core_type<tc>} {
    %c8 = arith.constant 8 : index
    %c0 = arith.constant 0 : index
    %0 = vector.load %arg1[%c8, %c0] : memref<56x8xf32, #tpu.memory_space<vmem>>, vector<8x8xf32>
    %c16 = arith.constant 16 : index
    %c0_0 = arith.constant 0 : index
    %1 = vector.load %arg1[%c16, %c0_0] : memref<56x8xf32, #tpu.memory_space<vmem>>, vector<8x8xf32>
    %c24 = arith.constant 24 : index
    %c0_1 = arith.constant 0 : index
    %2 = vector.load %arg1[%c24, %c0_1] : memref<56x8xf32, #tpu.memory_space<vmem>>, vector<8x8xf32>
    %c32 = arith.constant 32 : index
    %c0_2 = arith.constant 0 : index
    %3 = vector.load %arg1[%c32, %c0_2] : memref<56x8xf32, #tpu.memory_space<vmem>>, vector<1x8xf32>
    %c40 = arith.constant 40 : index
    %c0_3 = arith.constant 0 : index
    %4 = vector.load %arg1[%c40, %c0_3] : memref<56x8xf32, #tpu.memory_space<vmem>>, vector<8x8xf32>
    %c48 = arith.constant 48 : index
    %c0_4 = arith.constant 0 : index
    %5 = vector.load %arg1[%c48, %c0_4] : memref<56x8xf32, #tpu.memory_space<vmem>>, vector<1x8xf32>
    %c0_5 = arith.constant 0 : index
    %c0_6 = arith.constant 0 : index
    %6 = memref.load %arg0[%c0_5, %c0_6] : memref<2x8xi32, #tpu.memory_space<smem>>
    %c0_i32 = arith.constant 0 : i32
    %7 = arith.addi %c0_i32, %6 : i32
    %8 = arith.index_cast %7 : i32 to index
    %c0_7 = arith.constant 0 : index
    %9 = vector.load %arg1[%8, %c0_7] : memref<56x8xf32, #tpu.memory_space<vmem>>, vector<1x8xf32>
    %c0_8 = arith.constant 0 : index
    %c0_9 = arith.constant 0 : index
    %10 = vector.load %arg3[%c0_8, %c0_9] : memref<16x8xf32, #tpu.memory_space<vmem>>, vector<1x8xf32>
    tpu.vector_store %arg3[%c0_8, %c0_9], %9 {strides = array<i32>} : memref<16x8xf32, #tpu.memory_space<vmem>>, vector<1x8xf32>,
    %c1 = arith.constant 1 : index
    %c0_10 = arith.constant 0 : index
    %11 = memref.load %arg0[%c1, %c0_10] : memref<2x8xi32, #tpu.memory_space<smem>>
    %c0_i32_11 = arith.constant 0 : i32
    %12 = arith.addi %c0_i32_11, %11 : i32
    %13 = arith.index_cast %12 : i32 to index
    %c0_12 = arith.constant 0 : index
    %14 = vector.load %arg1[%13, %c0_12] : memref<56x8xf32, #tpu.memory_space<vmem>>, vector<1x8xf32>
    %c1_13 = arith.constant 1 : index
    %c0_14 = arith.constant 0 : index
    %15 = vector.load %arg3[%c1_13, %c0_14] : memref<16x8xf32, #tpu.memory_space<vmem>>, vector<1x8xf32>
    tpu.vector_store %arg3[%c1_13, %c0_14], %14 {strides = array<i32>} : memref<16x8xf32, #tpu.memory_space<vmem>>, vector<1x8xf32>,
    %c0_15 = arith.constant 0 : index
    %c1_16 = arith.constant 1 : index
    %16 = memref.load %arg0[%c0_15, %c1_16] : memref<2x8xi32, #tpu.memory_space<smem>>
    %c0_i32_17 = arith.constant 0 : i32
    %17 = arith.addi %c0_i32_17, %16 : i32
    %18 = arith.index_cast %17 : i32 to index
    %c0_18 = arith.constant 0 : index
    %19 = vector.load %arg1[%18, %c0_18] : memref<56x8xf32, #tpu.memory_space<vmem>>, vector<1x8xf32>
    %c2 = arith.constant 2 : index
    %c0_19 = arith.constant 0 : index
    %20 = vector.load %arg3[%c2, %c0_19] : memref<16x8xf32, #tpu.memory_space<vmem>>, vector<1x8xf32>
    tpu.vector_store %arg3[%c2, %c0_19], %19 {strides = array<i32>} : memref<16x8xf32, #tpu.memory_space<vmem>>, vector<1x8xf32>,
    %c1_20 = arith.constant 1 : index
    %c1_21 = arith.constant 1 : index
    %21 = memref.load %arg0[%c1_20, %c1_21] : memref<2x8xi32, #tpu.memory_space<smem>>
    %c0_i32_22 = arith.constant 0 : i32
    %22 = arith.addi %c0_i32_22, %21 : i32
    %23 = arith.index_cast %22 : i32 to index
    %c0_23 = arith.constant 0 : index
    %24 = vector.load %arg1[%23, %c0_23] : memref<56x8xf32, #tpu.memory_space<vmem>>, vector<1x8xf32>
    %c3 = arith.constant 3 : index
    %c0_24 = arith.constant 0 : index
    %25 = vector.load %arg3[%c3, %c0_24] : memref<16x8xf32, #tpu.memory_space<vmem>>, vector<1x8xf32>
    tpu.vector_store %arg3[%c3, %c0_24], %24 {strides = array<i32>} : memref<16x8xf32, #tpu.memory_space<vmem>>, vector<1x8xf32>,
    %c0_25 = arith.constant 0 : index
    %c2_26 = arith.constant 2 : index
    %26 = memref.load %arg0[%c0_25, %c2_26] : memref<2x8xi32, #tpu.memory_space<smem>>
    %c0_i32_27 = arith.constant 0 : i32
    %27 = arith.addi %c0_i32_27, %26 : i32
    %28 = arith.index_cast %27 : i32 to index
    %c0_28 = arith.constant 0 : index
    %29 = vector.load %arg1[%28, %c0_28] : memref<56x8xf32, #tpu.memory_space<vmem>>, vector<1x8xf32>
    %c4 = arith.constant 4 : index
    %c0_29 = arith.constant 0 : index
    %30 = vector.load %arg3[%c4, %c0_29] : memref<16x8xf32, #tpu.memory_space<vmem>>, vector<1x8xf32>
    tpu.vector_store %arg3[%c4, %c0_29], %29 {strides = array<i32>} : memref<16x8xf32, #tpu.memory_space<vmem>>, vector<1x8xf32>,
    %c1_30 = arith.constant 1 : index
    %c2_31 = arith.constant 2 : index
    %31 = memref.load %arg0[%c1_30, %c2_31] : memref<2x8xi32, #tpu.memory_space<smem>>
    %c0_i32_32 = arith.constant 0 : i32
    %32 = arith.addi %c0_i32_32, %31 : i32
    %33 = arith.index_cast %32 : i32 to index
    %c0_33 = arith.constant 0 : index
    %34 = vector.load %arg1[%33, %c0_33] : memref<56x8xf32, #tpu.memory_space<vmem>>, vector<1x8xf32>
    %c5 = arith.constant 5 : index
    %c0_34 = arith.constant 0 : index
    %35 = vector.load %arg3[%c5, %c0_34] : memref<16x8xf32, #tpu.memory_space<vmem>>, vector<1x8xf32>
    tpu.vector_store %arg3[%c5, %c0_34], %34 {strides = array<i32>} : memref<16x8xf32, #tpu.memory_space<vmem>>, vector<1x8xf32>,
    %c0_35 = arith.constant 0 : index
    %c3_36 = arith.constant 3 : index
    %36 = memref.load %arg0[%c0_35, %c3_36] : memref<2x8xi32, #tpu.memory_space<smem>>
    %c0_i32_37 = arith.constant 0 : i32
    %37 = arith.addi %c0_i32_37, %36 : i32
    %38 = arith.index_cast %37 : i32 to index
    %c0_38 = arith.constant 0 : index
    %39 = vector.load %arg1[%38, %c0_38] : memref<56x8xf32, #tpu.memory_space<vmem>>, vector<1x8xf32>
    %c6 = arith.constant 6 : index
    %c0_39 = arith.constant 0 : index
    %40 = vector.load %arg3[%c6, %c0_39] : memref<16x8xf32, #tpu.memory_space<vmem>>, vector<1x8xf32>
    tpu.vector_store %arg3[%c6, %c0_39], %39 {strides = array<i32>} : memref<16x8xf32, #tpu.memory_space<vmem>>, vector<1x8xf32>,
    %c1_40 = arith.constant 1 : index
    %c3_41 = arith.constant 3 : index
    %41 = memref.load %arg0[%c1_40, %c3_41] : memref<2x8xi32, #tpu.memory_space<smem>>
    %c0_i32_42 = arith.constant 0 : i32
    %42 = arith.addi %c0_i32_42, %41 : i32
    %43 = arith.index_cast %42 : i32 to index
    %c0_43 = arith.constant 0 : index
    %44 = vector.load %arg1[%43, %c0_43] : memref<56x8xf32, #tpu.memory_space<vmem>>, vector<1x8xf32>
    %c7 = arith.constant 7 : index
    %c0_44 = arith.constant 0 : index
    %45 = vector.load %arg3[%c7, %c0_44] : memref<16x8xf32, #tpu.memory_space<vmem>>, vector<1x8xf32>
    tpu.vector_store %arg3[%c7, %c0_44], %44 {strides = array<i32>} : memref<16x8xf32, #tpu.memory_space<vmem>>, vector<1x8xf32>,
    %c0_45 = arith.constant 0 : index
    %c4_46 = arith.constant 4 : index
    %46 = memref.load %arg0[%c0_45, %c4_46] : memref<2x8xi32, #tpu.memory_space<smem>>
    %c0_i32_47 = arith.constant 0 : i32
    %47 = arith.addi %c0_i32_47, %46 : i32
    %48 = arith.index_cast %47 : i32 to index
    %c0_48 = arith.constant 0 : index
    %49 = vector.load %arg1[%48, %c0_48] : memref<56x8xf32, #tpu.memory_space<vmem>>, vector<1x8xf32>
    %c8_49 = arith.constant 8 : index
    %c0_50 = arith.constant 0 : index
    %50 = vector.load %arg3[%c8_49, %c0_50] : memref<16x8xf32, #tpu.memory_space<vmem>>, vector<1x8xf32>
    tpu.vector_store %arg3[%c8_49, %c0_50], %49 {strides = array<i32>} : memref<16x8xf32, #tpu.memory_space<vmem>>, vector<1x8xf32>,
    %c1_51 = arith.constant 1 : index
    %c4_52 = arith.constant 4 : index
    %51 = memref.load %arg0[%c1_51, %c4_52] : memref<2x8xi32, #tpu.memory_space<smem>>
    %c0_i32_53 = arith.constant 0 : i32
    %52 = arith.addi %c0_i32_53, %51 : i32
    %53 = arith.index_cast %52 : i32 to index
    %c0_54 = arith.constant 0 : index
    %54 = vector.load %arg1[%53, %c0_54] : memref<56x8xf32, #tpu.memory_space<vmem>>, vector<1x8xf32>
    %c9 = arith.constant 9 : index
    %c0_55 = arith.constant 0 : index
    %55 = vector.load %arg3[%c9, %c0_55] : memref<16x8xf32, #tpu.memory_space<vmem>>, vector<1x8xf32>
    tpu.vector_store %arg3[%c9, %c0_55], %54 {strides = array<i32>} : memref<16x8xf32, #tpu.memory_space<vmem>>, vector<1x8xf32>,
    %c0_56 = arith.constant 0 : index
    %c5_57 = arith.constant 5 : index
    %56 = memref.load %arg0[%c0_56, %c5_57] : memref<2x8xi32, #tpu.memory_space<smem>>
    %c0_i32_58 = arith.constant 0 : i32
    %57 = arith.addi %c0_i32_58, %56 : i32
    %58 = arith.index_cast %57 : i32 to index
    %c0_59 = arith.constant 0 : index
    %59 = vector.load %arg1[%58, %c0_59] : memref<56x8xf32, #tpu.memory_space<vmem>>, vector<1x8xf32>
    %c10 = arith.constant 10 : index
    %c0_60 = arith.constant 0 : index
    %60 = vector.load %arg3[%c10, %c0_60] : memref<16x8xf32, #tpu.memory_space<vmem>>, vector<1x8xf32>
    tpu.vector_store %arg3[%c10, %c0_60], %59 {strides = array<i32>} : memref<16x8xf32, #tpu.memory_space<vmem>>, vector<1x8xf32>,
    %c1_61 = arith.constant 1 : index
    %c5_62 = arith.constant 5 : index
    %61 = memref.load %arg0[%c1_61, %c5_62] : memref<2x8xi32, #tpu.memory_space<smem>>
    %c0_i32_63 = arith.constant 0 : i32
    %62 = arith.addi %c0_i32_63, %61 : i32
    %63 = arith.index_cast %62 : i32 to index
    %c0_64 = arith.constant 0 : index
    %64 = vector.load %arg1[%63, %c0_64] : memref<56x8xf32, #tpu.memory_space<vmem>>, vector<1x8xf32>
    %c11 = arith.constant 11 : index
    %c0_65 = arith.constant 0 : index
    %65 = vector.load %arg3[%c11, %c0_65] : memref<16x8xf32, #tpu.memory_space<vmem>>, vector<1x8xf32>
    tpu.vector_store %arg3[%c11, %c0_65], %64 {strides = array<i32>} : memref<16x8xf32, #tpu.memory_space<vmem>>, vector<1x8xf32>,
    %c0_66 = arith.constant 0 : index
    %c6_67 = arith.constant 6 : index
    %66 = memref.load %arg0[%c0_66, %c6_67] : memref<2x8xi32, #tpu.memory_space<smem>>
    %c0_i32_68 = arith.constant 0 : i32
    %67 = arith.addi %c0_i32_68, %66 : i32
    %68 = arith.index_cast %67 : i32 to index
    %c0_69 = arith.constant 0 : index
    %69 = vector.load %arg1[%68, %c0_69] : memref<56x8xf32, #tpu.memory_space<vmem>>, vector<1x8xf32>
    %c12 = arith.constant 12 : index
    %c0_70 = arith.constant 0 : index
    %70 = vector.load %arg3[%c12, %c0_70] : memref<16x8xf32, #tpu.memory_space<vmem>>, vector<1x8xf32>
    tpu.vector_store %arg3[%c12, %c0_70], %69 {strides = array<i32>} : memref<16x8xf32, #tpu.memory_space<vmem>>, vector<1x8xf32>,
    %c1_71 = arith.constant 1 : index
    %c6_72 = arith.constant 6 : index
    %71 = memref.load %arg0[%c1_71, %c6_72] : memref<2x8xi32, #tpu.memory_space<smem>>
    %c0_i32_73 = arith.constant 0 : i32
    %72 = arith.addi %c0_i32_73, %71 : i32
    %73 = arith.index_cast %72 : i32 to index
    %c0_74 = arith.constant 0 : index
    %74 = vector.load %arg1[%73, %c0_74] : memref<56x8xf32, #tpu.memory_space<vmem>>, vector<1x8xf32>
    %c13 = arith.constant 13 : index
    %c0_75 = arith.constant 0 : index
    %75 = vector.load %arg3[%c13, %c0_75] : memref<16x8xf32, #tpu.memory_space<vmem>>, vector<1x8xf32>
    tpu.vector_store %arg3[%c13, %c0_75], %74 {strides = array<i32>} : memref<16x8xf32, #tpu.memory_space<vmem>>, vector<1x8xf32>,
    %c0_76 = arith.constant 0 : index
    %c7_77 = arith.constant 7 : index
    %76 = memref.load %arg0[%c0_76, %c7_77] : memref<2x8xi32, #tpu.memory_space<smem>>
    %c0_i32_78 = arith.constant 0 : i32
    %77 = arith.addi %c0_i32_78, %76 : i32
    %78 = arith.index_cast %77 : i32 to index
    %c0_79 = arith.constant 0 : index
    %79 = vector.load %arg1[%78, %c0_79] : memref<56x8xf32, #tpu.memory_space<vmem>>, vector<1x8xf32>
    %c14 = arith.constant 14 : index
    %c0_80 = arith.constant 0 : index
    %80 = vector.load %arg3[%c14, %c0_80] : memref<16x8xf32, #tpu.memory_space<vmem>>, vector<1x8xf32>
    tpu.vector_store %arg3[%c14, %c0_80], %79 {strides = array<i32>} : memref<16x8xf32, #tpu.memory_space<vmem>>, vector<1x8xf32>,
    %c1_81 = arith.constant 1 : index
    %c7_82 = arith.constant 7 : index
    %81 = memref.load %arg0[%c1_81, %c7_82] : memref<2x8xi32, #tpu.memory_space<smem>>
    %c0_i32_83 = arith.constant 0 : i32
    %82 = arith.addi %c0_i32_83, %81 : i32
    %83 = arith.index_cast %82 : i32 to index
    %c0_84 = arith.constant 0 : index
    %84 = vector.load %arg1[%83, %c0_84] : memref<56x8xf32, #tpu.memory_space<vmem>>, vector<1x8xf32>
    %c15 = arith.constant 15 : index
    %c0_85 = arith.constant 0 : index
    %85 = vector.load %arg3[%c15, %c0_85] : memref<16x8xf32, #tpu.memory_space<vmem>>, vector<1x8xf32>
    tpu.vector_store %arg3[%c15, %c0_85], %84 {strides = array<i32>} : memref<16x8xf32, #tpu.memory_space<vmem>>, vector<1x8xf32>,
    %86 = vector.shape_cast %3 : vector<1x8xf32> to vector<1x8xf32>
    %87 = vector.broadcast %86 : vector<1x8xf32> to vector<2x8xf32>
    %cst = arith.constant 0.000000e+00 : f32
    %88 = vector.broadcast %cst : f32 to vector<2x8xf32>
    %cst_86 = arith.constant 0.000000e+00 : f32
    %89 = vector.broadcast %cst_86 : f32 to vector<2x8xf32>
    %c0_87 = arith.constant 0 : index
    %c0_88 = arith.constant 0 : index
    %90 = vector.load %arg3[%c0_87, %c0_88] : memref<16x8xf32, #tpu.memory_space<vmem>>, vector<2x8xf32>
    %cst_89 = arith.constant dense<0.000000e+00> : vector<2x8xf32>
    %91 = tpu.matmul %89, %2, %cst_89 {dimension_numbers = #tpu.dot_dimension_numbers<[1], [0], [0], [1], [0, 0, 1, 1], [], []>} : vector<2x8xf32>, vector<8x8xf32>, vector<2x8xf32> -> vector<2x8xf32>
    %92 = arith.addf %91, %87 : vector<2x8xf32>
    %cst_90 = arith.constant dense<0.000000e+00> : vector<2x8xf32>
    %93 = tpu.matmul %88, %0, %cst_90 {dimension_numbers = #tpu.dot_dimension_numbers<[1], [0], [0], [1], [0, 0, 1, 1], [], []>} : vector<2x8xf32>, vector<8x8xf32>, vector<2x8xf32> -> vector<2x8xf32>
    %94 = arith.addf %90, %93 : vector<2x8xf32>
    %95 = math.tanh %94 : vector<2x8xf32>
    %cst_91 = arith.constant dense<0.000000e+00> : vector<2x8xf32>
    %96 = tpu.matmul %95, %1, %cst_91 {dimension_numbers = #tpu.dot_dimension_numbers<[1], [0], [0], [1], [0, 0, 1, 1], [], []>} : vector<2x8xf32>, vector<8x8xf32>, vector<2x8xf32> -> vector<2x8xf32>
    %97 = arith.addf %96, %92 : vector<2x8xf32>
    %98 = math.tanh %97 : vector<2x8xf32>
    %99 = vector.extract_strided_slice %98 {offsets = [0, 0], sizes = [1, 8], strides = [1, 1]} : vector<2x8xf32> to vector<1x8xf32>
    %c0_92 = arith.constant 0 : index
    %c0_93 = arith.constant 0 : index
    %100 = vector.load %arg4[%c0_92, %c0_93] : memref<16x8xf32, #tpu.memory_space<vmem>>, vector<1x8xf32>
    tpu.vector_store %arg4[%c0_92, %c0_93], %99 {strides = array<i32>} : memref<16x8xf32, #tpu.memory_space<vmem>>, vector<1x8xf32>,
    %101 = vector.extract_strided_slice %98 {offsets = [1, 0], sizes = [1, 8], strides = [1, 1]} : vector<2x8xf32> to vector<1x8xf32>
    %c8_94 = arith.constant 8 : index
    %c0_95 = arith.constant 0 : index
    %102 = vector.load %arg4[%c8_94, %c0_95] : memref<16x8xf32, #tpu.memory_space<vmem>>, vector<1x8xf32>
    tpu.vector_store %arg4[%c8_94, %c0_95], %101 {strides = array<i32>} : memref<16x8xf32, #tpu.memory_space<vmem>>, vector<1x8xf32>,
    %c2_96 = arith.constant 2 : index
    %c0_97 = arith.constant 0 : index
    %103 = vector.load %arg3[%c2_96, %c0_97] : memref<16x8xf32, #tpu.memory_space<vmem>>, vector<2x8xf32>
    %cst_98 = arith.constant dense<0.000000e+00> : vector<2x8xf32>
    %104 = tpu.matmul %98, %2, %cst_98 {dimension_numbers = #tpu.dot_dimension_numbers<[1], [0], [0], [1], [0, 0, 1, 1], [], []>} : vector<2x8xf32>, vector<8x8xf32>, vector<2x8xf32> -> vector<2x8xf32>
    %105 = arith.addf %104, %87 : vector<2x8xf32>
    %cst_99 = arith.constant dense<0.000000e+00> : vector<2x8xf32>
    %106 = tpu.matmul %95, %0, %cst_99 {dimension_numbers = #tpu.dot_dimension_numbers<[1], [0], [0], [1], [0, 0, 1, 1], [], []>} : vector<2x8xf32>, vector<8x8xf32>, vector<2x8xf32> -> vector<2x8xf32>
    %107 = arith.addf %103, %106 : vector<2x8xf32>
    %108 = math.tanh %107 : vector<2x8xf32>
    %cst_100 = arith.constant dense<0.000000e+00> : vector<2x8xf32>
    %109 = tpu.matmul %108, %1, %cst_100 {dimension_numbers = #tpu.dot_dimension_numbers<[1], [0], [0], [1], [0, 0, 1, 1], [], []>} : vector<2x8xf32>, vector<8x8xf32>, vector<2x8xf32> -> vector<2x8xf32>
    %110 = arith.addf %109, %105 : vector<2x8xf32>
    %111 = math.tanh %110 : vector<2x8xf32>
    %112 = vector.extract_strided_slice %111 {offsets = [0, 0], sizes = [1, 8], strides = [1, 1]} : vector<2x8xf32> to vector<1x8xf32>
    %c1_101 = arith.constant 1 : index
    %c0_102 = arith.constant 0 : index
    %113 = vector.load %arg4[%c1_101, %c0_102] : memref<16x8xf32, #tpu.memory_space<vmem>>, vector<1x8xf32>
    tpu.vector_store %arg4[%c1_101, %c0_102], %112 {strides = array<i32>} : memref<16x8xf32, #tpu.memory_space<vmem>>, vector<1x8xf32>,
    %114 = vector.extract_strided_slice %111 {offsets = [1, 0], sizes = [1, 8], strides = [1, 1]} : vector<2x8xf32> to vector<1x8xf32>
    %c9_103 = arith.constant 9 : index
    %c0_104 = arith.constant 0 : index
    %115 = vector.load %arg4[%c9_103, %c0_104] : memref<16x8xf32, #tpu.memory_space<vmem>>, vector<1x8xf32>
    tpu.vector_store %arg4[%c9_103, %c0_104], %114 {strides = array<i32>} : memref<16x8xf32, #tpu.memory_space<vmem>>, vector<1x8xf32>,
    %c4_105 = arith.constant 4 : index
    %c0_106 = arith.constant 0 : index
    %116 = vector.load %arg3[%c4_105, %c0_106] : memref<16x8xf32, #tpu.memory_space<vmem>>, vector<2x8xf32>
    %cst_107 = arith.constant dense<0.000000e+00> : vector<2x8xf32>
    %117 = tpu.matmul %111, %2, %cst_107 {dimension_numbers = #tpu.dot_dimension_numbers<[1], [0], [0], [1], [0, 0, 1, 1], [], []>} : vector<2x8xf32>, vector<8x8xf32>, vector<2x8xf32> -> vector<2x8xf32>
    %118 = arith.addf %117, %87 : vector<2x8xf32>
    %cst_108 = arith.constant dense<0.000000e+00> : vector<2x8xf32>
    %119 = tpu.matmul %108, %0, %cst_108 {dimension_numbers = #tpu.dot_dimension_numbers<[1], [0], [0], [1], [0, 0, 1, 1], [], []>} : vector<2x8xf32>, vector<8x8xf32>, vector<2x8xf32> -> vector<2x8xf32>
    %120 = arith.addf %116, %119 : vector<2x8xf32>
    %121 = math.tanh %120 : vector<2x8xf32>
    %cst_109 = arith.constant dense<0.000000e+00> : vector<2x8xf32>
    %122 = tpu.matmul %121, %1, %cst_109 {dimension_numbers = #tpu.dot_dimension_numbers<[1], [0], [0], [1], [0, 0, 1, 1], [], []>} : vector<2x8xf32>, vector<8x8xf32>, vector<2x8xf32> -> vector<2x8xf32>
    %123 = arith.addf %122, %118 : vector<2x8xf32>
    %124 = math.tanh %123 : vector<2x8xf32>
    %125 = vector.extract_strided_slice %124 {offsets = [0, 0], sizes = [1, 8], strides = [1, 1]} : vector<2x8xf32> to vector<1x8xf32>
    %c2_110 = arith.constant 2 : index
    %c0_111 = arith.constant 0 : index
    %126 = vector.load %arg4[%c2_110, %c0_111] : memref<16x8xf32, #tpu.memory_space<vmem>>, vector<1x8xf32>
    tpu.vector_store %arg4[%c2_110, %c0_111], %125 {strides = array<i32>} : memref<16x8xf32, #tpu.memory_space<vmem>>, vector<1x8xf32>,
    %127 = vector.extract_strided_slice %124 {offsets = [1, 0], sizes = [1, 8], strides = [1, 1]} : vector<2x8xf32> to vector<1x8xf32>
    %c10_112 = arith.constant 10 : index
    %c0_113 = arith.constant 0 : index
    %128 = vector.load %arg4[%c10_112, %c0_113] : memref<16x8xf32, #tpu.memory_space<vmem>>, vector<1x8xf32>
    tpu.vector_store %arg4[%c10_112, %c0_113], %127 {strides = array<i32>} : memref<16x8xf32, #tpu.memory_space<vmem>>, vector<1x8xf32>,
    %c6_114 = arith.constant 6 : index
    %c0_115 = arith.constant 0 : index
    %129 = vector.load %arg3[%c6_114, %c0_115] : memref<16x8xf32, #tpu.memory_space<vmem>>, vector<2x8xf32>
    %cst_116 = arith.constant dense<0.000000e+00> : vector<2x8xf32>
    %130 = tpu.matmul %124, %2, %cst_116 {dimension_numbers = #tpu.dot_dimension_numbers<[1], [0], [0], [1], [0, 0, 1, 1], [], []>} : vector<2x8xf32>, vector<8x8xf32>, vector<2x8xf32> -> vector<2x8xf32>
    %131 = arith.addf %130, %87 : vector<2x8xf32>
    %cst_117 = arith.constant dense<0.000000e+00> : vector<2x8xf32>
    %132 = tpu.matmul %121, %0, %cst_117 {dimension_numbers = #tpu.dot_dimension_numbers<[1], [0], [0], [1], [0, 0, 1, 1], [], []>} : vector<2x8xf32>, vector<8x8xf32>, vector<2x8xf32> -> vector<2x8xf32>
    %133 = arith.addf %129, %132 : vector<2x8xf32>
    %134 = math.tanh %133 : vector<2x8xf32>
    %cst_118 = arith.constant dense<0.000000e+00> : vector<2x8xf32>
    %135 = tpu.matmul %134, %1, %cst_118 {dimension_numbers = #tpu.dot_dimension_numbers<[1], [0], [0], [1], [0, 0, 1, 1], [], []>} : vector<2x8xf32>, vector<8x8xf32>, vector<2x8xf32> -> vector<2x8xf32>
    %136 = arith.addf %135, %131 : vector<2x8xf32>
    %137 = math.tanh %136 : vector<2x8xf32>
    %138 = vector.extract_strided_slice %137 {offsets = [0, 0], sizes = [1, 8], strides = [1, 1]} : vector<2x8xf32> to vector<1x8xf32>
    %c3_119 = arith.constant 3 : index
    %c0_120 = arith.constant 0 : index
    %139 = vector.load %arg4[%c3_119, %c0_120] : memref<16x8xf32, #tpu.memory_space<vmem>>, vector<1x8xf32>
    tpu.vector_store %arg4[%c3_119, %c0_120], %138 {strides = array<i32>} : memref<16x8xf32, #tpu.memory_space<vmem>>, vector<1x8xf32>,
    %140 = vector.extract_strided_slice %137 {offsets = [1, 0], sizes = [1, 8], strides = [1, 1]} : vector<2x8xf32> to vector<1x8xf32>
    %c11_121 = arith.constant 11 : index
    %c0_122 = arith.constant 0 : index
    %141 = vector.load %arg4[%c11_121, %c0_122] : memref<16x8xf32, #tpu.memory_space<vmem>>, vector<1x8xf32>
    tpu.vector_store %arg4[%c11_121, %c0_122], %140 {strides = array<i32>} : memref<16x8xf32, #tpu.memory_space<vmem>>, vector<1x8xf32>,
    %c8_123 = arith.constant 8 : index
    %c0_124 = arith.constant 0 : index
    %142 = vector.load %arg3[%c8_123, %c0_124] : memref<16x8xf32, #tpu.memory_space<vmem>>, vector<2x8xf32>
    %cst_125 = arith.constant dense<0.000000e+00> : vector<2x8xf32>
    %143 = tpu.matmul %137, %2, %cst_125 {dimension_numbers = #tpu.dot_dimension_numbers<[1], [0], [0], [1], [0, 0, 1, 1], [], []>} : vector<2x8xf32>, vector<8x8xf32>, vector<2x8xf32> -> vector<2x8xf32>
    %144 = arith.addf %143, %87 : vector<2x8xf32>
    %cst_126 = arith.constant dense<0.000000e+00> : vector<2x8xf32>
    %145 = tpu.matmul %134, %0, %cst_126 {dimension_numbers = #tpu.dot_dimension_numbers<[1], [0], [0], [1], [0, 0, 1, 1], [], []>} : vector<2x8xf32>, vector<8x8xf32>, vector<2x8xf32> -> vector<2x8xf32>
    %146 = arith.addf %142, %145 : vector<2x8xf32>
    %147 = math.tanh %146 : vector<2x8xf32>
    %cst_127 = arith.constant dense<0.000000e+00> : vector<2x8xf32>
    %148 = tpu.matmul %147, %1, %cst_127 {dimension_numbers = #tpu.dot_dimension_numbers<[1], [0], [0], [1], [0, 0, 1, 1], [], []>} : vector<2x8xf32>, vector<8x8xf32>, vector<2x8xf32> -> vector<2x8xf32>
    %149 = arith.addf %148, %144 : vector<2x8xf32>
    %150 = math.tanh %149 : vector<2x8xf32>
    %151 = vector.extract_strided_slice %150 {offsets = [0, 0], sizes = [1, 8], strides = [1, 1]} : vector<2x8xf32> to vector<1x8xf32>
    %c4_128 = arith.constant 4 : index
    %c0_129 = arith.constant 0 : index
    %152 = vector.load %arg4[%c4_128, %c0_129] : memref<16x8xf32, #tpu.memory_space<vmem>>, vector<1x8xf32>
    tpu.vector_store %arg4[%c4_128, %c0_129], %151 {strides = array<i32>} : memref<16x8xf32, #tpu.memory_space<vmem>>, vector<1x8xf32>,
    %153 = vector.extract_strided_slice %150 {offsets = [1, 0], sizes = [1, 8], strides = [1, 1]} : vector<2x8xf32> to vector<1x8xf32>
    %c12_130 = arith.constant 12 : index
    %c0_131 = arith.constant 0 : index
    %154 = vector.load %arg4[%c12_130, %c0_131] : memref<16x8xf32, #tpu.memory_space<vmem>>, vector<1x8xf32>
    tpu.vector_store %arg4[%c12_130, %c0_131], %153 {strides = array<i32>} : memref<16x8xf32, #tpu.memory_space<vmem>>, vector<1x8xf32>,
    %c10_132 = arith.constant 10 : index
    %c0_133 = arith.constant 0 : index
    %155 = vector.load %arg3[%c10_132, %c0_133] : memref<16x8xf32, #tpu.memory_space<vmem>>, vector<2x8xf32>
    %cst_134 = arith.constant dense<0.000000e+00> : vector<2x8xf32>
    %156 = tpu.matmul %150, %2, %cst_134 {dimension_numbers = #tpu.dot_dimension_numbers<[1], [0], [0], [1], [0, 0, 1, 1], [], []>} : vector<2x8xf32>, vector<8x8xf32>, vector<2x8xf32> -> vector<2x8xf32>
    %157 = arith.addf %156, %87 : vector<2x8xf32>
    %cst_135 = arith.constant dense<0.000000e+00> : vector<2x8xf32>
    %158 = tpu.matmul %147, %0, %cst_135 {dimension_numbers = #tpu.dot_dimension_numbers<[1], [0], [0], [1], [0, 0, 1, 1], [], []>} : vector<2x8xf32>, vector<8x8xf32>, vector<2x8xf32> -> vector<2x8xf32>
    %159 = arith.addf %155, %158 : vector<2x8xf32>
    %160 = math.tanh %159 : vector<2x8xf32>
    %cst_136 = arith.constant dense<0.000000e+00> : vector<2x8xf32>
    %161 = tpu.matmul %160, %1, %cst_136 {dimension_numbers = #tpu.dot_dimension_numbers<[1], [0], [0], [1], [0, 0, 1, 1], [], []>} : vector<2x8xf32>, vector<8x8xf32>, vector<2x8xf32> -> vector<2x8xf32>
    %162 = arith.addf %161, %157 : vector<2x8xf32>
    %163 = math.tanh %162 : vector<2x8xf32>
    %164 = vector.extract_strided_slice %163 {offsets = [0, 0], sizes = [1, 8], strides = [1, 1]} : vector<2x8xf32> to vector<1x8xf32>
    %c5_137 = arith.constant 5 : index
    %c0_138 = arith.constant 0 : index
    %165 = vector.load %arg4[%c5_137, %c0_138] : memref<16x8xf32, #tpu.memory_space<vmem>>, vector<1x8xf32>
    tpu.vector_store %arg4[%c5_137, %c0_138], %164 {strides = array<i32>} : memref<16x8xf32, #tpu.memory_space<vmem>>, vector<1x8xf32>,
    %166 = vector.extract_strided_slice %163 {offsets = [1, 0], sizes = [1, 8], strides = [1, 1]} : vector<2x8xf32> to vector<1x8xf32>
    %c13_139 = arith.constant 13 : index
    %c0_140 = arith.constant 0 : index
    %167 = vector.load %arg4[%c13_139, %c0_140] : memref<16x8xf32, #tpu.memory_space<vmem>>, vector<1x8xf32>
    tpu.vector_store %arg4[%c13_139, %c0_140], %166 {strides = array<i32>} : memref<16x8xf32, #tpu.memory_space<vmem>>, vector<1x8xf32>,
    %c12_141 = arith.constant 12 : index
    %c0_142 = arith.constant 0 : index
    %168 = vector.load %arg3[%c12_141, %c0_142] : memref<16x8xf32, #tpu.memory_space<vmem>>, vector<2x8xf32>
    %cst_143 = arith.constant dense<0.000000e+00> : vector<2x8xf32>
    %169 = tpu.matmul %163, %2, %cst_143 {dimension_numbers = #tpu.dot_dimension_numbers<[1], [0], [0], [1], [0, 0, 1, 1], [], []>} : vector<2x8xf32>, vector<8x8xf32>, vector<2x8xf32> -> vector<2x8xf32>
    %170 = arith.addf %169, %87 : vector<2x8xf32>
    %cst_144 = arith.constant dense<0.000000e+00> : vector<2x8xf32>
    %171 = tpu.matmul %160, %0, %cst_144 {dimension_numbers = #tpu.dot_dimension_numbers<[1], [0], [0], [1], [0, 0, 1, 1], [], []>} : vector<2x8xf32>, vector<8x8xf32>, vector<2x8xf32> -> vector<2x8xf32>
    %172 = arith.addf %168, %171 : vector<2x8xf32>
    %173 = math.tanh %172 : vector<2x8xf32>
    %cst_145 = arith.constant dense<0.000000e+00> : vector<2x8xf32>
    %174 = tpu.matmul %173, %1, %cst_145 {dimension_numbers = #tpu.dot_dimension_numbers<[1], [0], [0], [1], [0, 0, 1, 1], [], []>} : vector<2x8xf32>, vector<8x8xf32>, vector<2x8xf32> -> vector<2x8xf32>
    %175 = arith.addf %174, %170 : vector<2x8xf32>
    %176 = math.tanh %175 : vector<2x8xf32>
    %177 = vector.extract_strided_slice %176 {offsets = [0, 0], sizes = [1, 8], strides = [1, 1]} : vector<2x8xf32> to vector<1x8xf32>
    %c6_146 = arith.constant 6 : index
    %c0_147 = arith.constant 0 : index
    %178 = vector.load %arg4[%c6_146, %c0_147] : memref<16x8xf32, #tpu.memory_space<vmem>>, vector<1x8xf32>
    tpu.vector_store %arg4[%c6_146, %c0_147], %177 {strides = array<i32>} : memref<16x8xf32, #tpu.memory_space<vmem>>, vector<1x8xf32>,
    %179 = vector.extract_strided_slice %176 {offsets = [1, 0], sizes = [1, 8], strides = [1, 1]} : vector<2x8xf32> to vector<1x8xf32>
    %c14_148 = arith.constant 14 : index
    %c0_149 = arith.constant 0 : index
    %180 = vector.load %arg4[%c14_148, %c0_149] : memref<16x8xf32, #tpu.memory_space<vmem>>, vector<1x8xf32>
    tpu.vector_store %arg4[%c14_148, %c0_149], %179 {strides = array<i32>} : memref<16x8xf32, #tpu.memory_space<vmem>>, vector<1x8xf32>,
    %c14_150 = arith.constant 14 : index
    %c0_151 = arith.constant 0 : index
    %181 = vector.load %arg3[%c14_150, %c0_151] : memref<16x8xf32, #tpu.memory_space<vmem>>, vector<2x8xf32>
    %cst_152 = arith.constant dense<0.000000e+00> : vector<2x8xf32>
    %182 = tpu.matmul %176, %2, %cst_152 {dimension_numbers = #tpu.dot_dimension_numbers<[1], [0], [0], [1], [0, 0, 1, 1], [], []>} : vector<2x8xf32>, vector<8x8xf32>, vector<2x8xf32> -> vector<2x8xf32>
    %183 = arith.addf %182, %87 : vector<2x8xf32>
    %cst_153 = arith.constant dense<0.000000e+00> : vector<2x8xf32>
    %184 = tpu.matmul %173, %0, %cst_153 {dimension_numbers = #tpu.dot_dimension_numbers<[1], [0], [0], [1], [0, 0, 1, 1], [], []>} : vector<2x8xf32>, vector<8x8xf32>, vector<2x8xf32> -> vector<2x8xf32>
    %185 = arith.addf %181, %184 : vector<2x8xf32>
    %186 = math.tanh %185 : vector<2x8xf32>
    %cst_154 = arith.constant dense<0.000000e+00> : vector<2x8xf32>
    %187 = tpu.matmul %186, %1, %cst_154 {dimension_numbers = #tpu.dot_dimension_numbers<[1], [0], [0], [1], [0, 0, 1, 1], [], []>} : vector<2x8xf32>, vector<8x8xf32>, vector<2x8xf32> -> vector<2x8xf32>
    %188 = arith.addf %187, %183 : vector<2x8xf32>
    %189 = math.tanh %188 : vector<2x8xf32>
    %190 = vector.extract_strided_slice %189 {offsets = [0, 0], sizes = [1, 8], strides = [1, 1]} : vector<2x8xf32> to vector<1x8xf32>
    %c7_155 = arith.constant 7 : index
    %c0_156 = arith.constant 0 : index
    %191 = vector.load %arg4[%c7_155, %c0_156] : memref<16x8xf32, #tpu.memory_space<vmem>>, vector<1x8xf32>
    tpu.vector_store %arg4[%c7_155, %c0_156], %190 {strides = array<i32>} : memref<16x8xf32, #tpu.memory_space<vmem>>, vector<1x8xf32>,
    %192 = vector.extract_strided_slice %189 {offsets = [1, 0], sizes = [1, 8], strides = [1, 1]} : vector<2x8xf32> to vector<1x8xf32>
    %c15_157 = arith.constant 15 : index
    %c0_158 = arith.constant 0 : index
    %193 = vector.load %arg4[%c15_157, %c0_158] : memref<16x8xf32, #tpu.memory_space<vmem>>, vector<1x8xf32>
    tpu.vector_store %arg4[%c15_157, %c0_158], %192 {strides = array<i32>} : memref<16x8xf32, #tpu.memory_space<vmem>>, vector<1x8xf32>,
    %c0_159 = arith.constant 0 : index
    %c0_160 = arith.constant 0 : index
    %194 = vector.load %arg4[%c0_159, %c0_160] : memref<16x8xf32, #tpu.memory_space<vmem>>, vector<16x8xf32>
    %cst_161 = arith.constant dense<0.000000e+00> : vector<16x8xf32>
    %195 = tpu.matmul %194, %4, %cst_161 {dimension_numbers = #tpu.dot_dimension_numbers<[1], [0], [0], [1], [0, 0, 1, 1], [], []>} : vector<16x8xf32>, vector<8x8xf32>, vector<16x8xf32> -> vector<16x8xf32>
    %196 = vector.broadcast %5 : vector<1x8xf32> to vector<16x8xf32>
    %197 = arith.addf %195, %196 : vector<16x8xf32>
    %198 = vector.extract_strided_slice %197 {offsets = [0, 0], sizes = [16, 4], strides = [1, 1]} : vector<16x8xf32> to vector<16x4xf32>
    %c0_162 = arith.constant 0 : index
    %c0_163 = arith.constant 0 : index
    %199 = vector.load %arg2[%c0_162, %c0_163] : memref<16x4xf32, #tpu.memory_space<vmem>>, vector<16x4xf32>
    tpu.vector_store %arg2[%c0_162, %c0_163], %198 {strides = array<i32>} : memref<16x4xf32, #tpu.memory_space<vmem>>, vector<16x4xf32>,
    return
  }
}

</mosaic_0001>

<bundles_post_ra>
// kernel: tpu_custom_call.1
= control target key start
LH: loop header
LB: loop body
LE: loop exit
PB: predicated region body
PF: predicated region fallthrough
CT: control target
= control target key end

     0   :  { %7 = vsyncpa [#allocation5], 0  ;;  %s2541_s0 = inlined_call_operand.vmem [shape: s32[2,8], index: 0, kind: input, shape index: {}]   ;;  %s2542_s1 = inlined_call_operand.vmem [shape: f32[56,8], index: 1, kind: input, shape index: {}]   ;;  %s2543_s2 = inlined_call_operand.vmem [shape: f32[16,4], index: 2, kind: output, shape index: {}]  }
   0x1   :  { %s14_s11 = sshll.u32 %s2541_s0, 4  ;;  %s15_s11 = int_to_ptr.vmem [resolvable:$true] %s14_s11 }
   0x2   :  { %s2264_s12 = scalar_lea.vmem %s15_s11, 32  ;;  %p2269_p1 = scmp.lt.s32.totalorder %s15_s11, %s15_s11 }
   0x3   :  { %p2265_p0 = scmp.ne.s32.totalorder %s15_s11, %s2264_s12  ;;  %p2270_p2 = scmp.lt.s32.totalorder %s2264_s12, %s2264_s12 }
   0x5   :  { %p2271_p3 = por %p2270_p2, %p2269_p1 }
   0x7   :  { %p2272_p4 = pnand %p2271_p3, %p2265_p0 }
   0x9   :  { %2275 = shalt.err (!%p2272_p4)
}
   0xa   :  { %s2278_s13 = smov [#allocation4]  }
   0xb   :  { %17 = dma.vmem_to_smem %s15_s11, 32, %s2278_s13, [#allocation5]  }
   0xc   :  { %2276 = dma.done.wait [#allocation5], 32  }
   0xd   :  { %2277 = vsyncadd [#allocation5], 4294967264 }
   0xe   :  { %23 = sfence }
   0xf   :  { %v2302_v0 = vld [vmem:[%s2542_s1 + $0x8] sm:$0xff]  ;;  %s30_s16 = sld [smem:[#allocation4]]  ;;  %v2279_v1 = vmov 0.0   ;;  %vm2280_vm0 = vmmov 0   ;;  %vm33_vm1 = vcmask 57344   ;;  %v2326_v4 = vld [vmem:[%s2542_s1 + $0x18] sm:$0xff] }
  0x10   :  { %2085 = vmatprep.subr.mxu1 %v2279_v1  ;;  %2087 = vmatprep.mubr.msk.f32.mxu1 %vm2280_vm0, %v2279_v1  ;;  %s1988_s0 = sld [smem:[#allocation4 + $0x80]]  ;;  %v2331_v5 = vld [vmem:[%s2542_s1 + $0x10] sm:$0xff]  ;;  %vm100_vm2 = vcmask 64512   ;;  %s1989_s27 = sld [smem:[#allocation4 + $0x1]]  ;;  %v2363_v13 = vld [vmem:[%s2542_s1 + $0x20] ss:$0 sm:$0xff] }
  0x11   :  { %2086 = vmatpush3.msra.mxu1 %v2302_v0  ;;  %2080 = vmatprep.subr.mxu0 %v2279_v1  ;;  %s1990_s28 = sld [smem:[#allocation4 + $0x81]]  ;;  %vm321_vm3 = vcmask 58369   ;;  %s1991_s9 = sld [smem:[#allocation4 + $0x2]]  ;;  %vm1964_vm4 = vcmask 31744  }
  0x12   :  { %2088 = vmatmul.mubr.f32.vlgmr.msra.gmra.mrb[0].mxu1 %v2279_v1  ;;  %2082 = vmatprep.mubr.msk.f32.mxu0 %vm2280_vm0, %v2279_v1  ;;  %s1992_s10 = sld [smem:[#allocation4 + $0x82]]  ;;  %s1994_s17 = sld [smem:[#allocation4 + $0x83]] }
  0x13   :  { %2095 = vmatprep.subr.mxu1 %v2279_v1  ;;  %2097 = vmatprep.mubr.msk.f32.mxu1 %vm2280_vm0, %v2279_v1  ;;  %s1995_s24 = sld [smem:[#allocation4 + $0x4]]  ;;  %s1997_s4 = sld [smem:[#allocation4 + $0x5]] }
  0x14   :  { %2081 = vmatpush3.msra.mxu0 %v2326_v4  ;;  %2096 = vmatpush3.msra.mxu1 %v2326_v4  ;;  %s1996_s25 = sld [smem:[#allocation4 + $0x84]]  ;;  %s1998_s5 = sld [smem:[#allocation4 + $0x85]] }
  0x15   :  { %s31_s19 = scalar_lea.vmem %s2542_s1, %s30_s16  ;;  %2090 = vmatprep.subr.mxu0 %v2279_v1  ;;  %2083 = vmatmul.mubr.f32.vlgmr.msra.gmra.mrb[0].mxu0 %v2279_v1  ;;  %s1999_s12 = sld [smem:[#allocation4 + $0x6]] }
  0x16   :  { %v32_v2 = vld [vmem:[%s31_s19] sm:$0x1]  ;;  %s36_s22 = scalar_lea.vmem %s2542_s1, %s1988_s0  ;;  %2091 = vmatpush3.msra.mxu0 %v2331_v5  ;;  %2092 = vmatprep.mubr.msk.f32.mxu0 %vm2280_vm0, %v2279_v1  ;;  %s40_s3 = scalar_lea.vmem %s2542_s1, %s1989_s27 }
  0x17   :  { %34 = vst.msk [vmem:[#allocation2] sm:$0x1] %vm33_vm1, %v32_v2  ;;  %v37_v3 = vld [vmem:[%s36_s22] sm:$0x1]  ;;  %2100 = vmatprep.subr.mxu0 %v2279_v1  ;;  %2105 = vmatprep.subr.mxu1 %v2279_v1  ;;  %s44_s6 = scalar_lea.vmem %s2542_s1, %s1990_s28  ;;  %s48_s13 = scalar_lea.vmem %s2542_s1, %s1991_s9 }
  0x18   :  { %38 = vst.msk [vmem:[#allocation2 + $0x1] sm:$0x1] %vm33_vm1, %v37_v3  ;;  %v41_v11 = vld [vmem:[%s40_s3] sm:$0x1]  ;;  %s52_s16 = scalar_lea.vmem %s2542_s1, %s1992_s10  ;;  %s1993_s0 = sld [smem:[#allocation4 + $0x3]] }
  0x19   :  { %v45_v12 = vld [vmem:[%s44_s6] sm:$0x1]  ;;  %42 = vst.msk [vmem:[#allocation2 + $0x2] sm:$0x1] %vm33_vm1, %v41_v11  ;;  %s60_s23 = scalar_lea.vmem %s2542_s1, %s1994_s17  ;;  %s64_s28 = scalar_lea.vmem %s2542_s1, %s1995_s24 }
  0x1a   :  { %46 = vst.msk [vmem:[#allocation2 + $0x3] sm:$0x1] %vm33_vm1, %v45_v12  ;;  %v49_v23 = vld [vmem:[%s48_s13] sm:$0x1]  ;;  %s68_s3 = scalar_lea.vmem %s2542_s1, %s1996_s25  ;;  %s72_s8 = scalar_lea.vmem %s2542_s1, %s1997_s4 }
  0x1b   :  { %v53_v24 = vld [vmem:[%s52_s16] sm:$0x1]  ;;  %50 = vst.msk [vmem:[#allocation2 + $0x4] sm:$0x1] %vm33_vm1, %v49_v23  ;;  %s76_s11 = scalar_lea.vmem %s2542_s1, %s1998_s5  ;;  %s2000_s13 = sld [smem:[#allocation4 + $0x86]] }
  0x1c   :  { %54 = vst.msk [vmem:[#allocation2 + $0x5] sm:$0x1] %vm33_vm1, %v53_v24  ;;  %v61_v35 = vld [vmem:[%s60_s23] sm:$0x1]  ;;  %s80_s16 = scalar_lea.vmem %s2542_s1, %s1999_s12  ;;  %s2001_s19 = sld [smem:[#allocation4 + $0x7]] }
  0x1d   :  { %62 = vst.msk [vmem:[#allocation2 + $0x7] sm:$0x1] %vm33_vm1, %v61_v35  ;;  %v65_v45 = vld [vmem:[%s64_s28] sm:$0x1] }
  0x1e   :  { %s56_s20 = scalar_lea.vmem %s2542_s1, %s1993_s0  ;;  %v69_v46 = vld [vmem:[%s68_s3] sm:$0x1]  ;;  %66 = vst.msk [vmem:[#allocation2 + $0x8] sm:$0x1] %vm33_vm1, %v65_v45 }
  0x1f   :  { %v99_v6 = vld [vmem:[#allocation2] sm:$0x3]  ;;  %70 = vst.msk [vmem:[#allocation2 + $0x9] sm:$0x1] %vm33_vm1, %v69_v46 }
  0x20   :  { %v57_v34 = vld [vmem:[%s56_s20] sm:$0x1]  ;;  %s2002_s20 = sld [smem:[#allocation4 + $0x87]] }
  0x21   :  { %v323_v17 = vld [vmem:[#allocation2 + $0x2] sm:$0x3]  ;;  %58 = vst.msk [vmem:[#allocation2 + $0x6] sm:$0x1] %vm33_vm1, %v57_v34  ;;  %v73_v56 = vld [vmem:[%s72_s8] sm:$0x1]  ;;  %s84_s18 = scalar_lea.vmem %s2542_s1, %s2000_s13 }
  0x22   :  { %v77_v57 = vld [vmem:[%s76_s11] sm:$0x1]  ;;  %74 = vst.msk [vmem:[#allocation2 + $0xa] sm:$0x1] %vm33_vm1, %v73_v56  ;;  %s88_s23 = scalar_lea.vmem %s2542_s1, %s2001_s19 }
  0x23   :  { %v545_v28 = vld [vmem:[#allocation2 + $0x4] sm:$0x3]  ;;  %78 = vst.msk [vmem:[#allocation2 + $0xb] sm:$0x1] %vm33_vm1, %v77_v57 }
  0x26   :  { %v989_v50 = vld [vmem:[#allocation2 + $0x8] sm:$0x3]  ;;  %s92_s26 = scalar_lea.vmem %s2542_s1, %s2002_s20 }
  0x28   :  { %v767_v39 = vld [vmem:[#allocation2 + $0x6] sm:$0x3] }
  0x2a   :  { %v1211_v61 = vld [vmem:[#allocation2 + $0xa] sm:$0x3] }
  0xe5   :  { %v240_v7 = vpop.f32.mrb[0].mxu1 }
  0xe6   :  { %v244_v8 = vadd.f32 %v240_v7, %v99_v6  ;;  %v2089_v9 = vpop.f32.mrb[1].mxu1  ;;  %v81_v7 = vld [vmem:[%s80_s16] sm:$0x1] }
  0xe7   :  { %82 = vst.msk [vmem:[#allocation2 + $0xc] sm:$0x1] %vm33_vm1, %v81_v7 }
  0xe8   :  { %2232 = vtanh.f32 %v244_v8  ;;  %v85_v8 = vld [vmem:[%s84_s18] sm:$0x1] }
  0xe9   :  { %86 = vst.msk [vmem:[#allocation2 + $0xd] sm:$0x1] %vm33_vm1, %v85_v8 }
  0xf0   :  { %v1433_v11 = vld [vmem:[#allocation2 + $0xc] sm:$0x3] }
  0xf2   :  { %v2233_v10 = vpop.eup %2232 }
  0xf3   :  { %2093 = vmatmul.mubr.msk.f32.vlgmr.msra.gmra.mrb[0].mxu0 %vm100_vm2, %v2233_v10 }
  0xf4   :  { %2101 = vmatpush3.msra.mxu0 %v2302_v0  ;;  %2102 = vmatprep.mubr.msk.f32.mxu0 %vm2280_vm0, %v2279_v1 }
  0xf5   :  { %2110 = vmatprep.subr.mxu0 %v2279_v1 }
  0xf7   :  { %2103 = vmatmul.mubr.msk.f32.vlgmr.msra.gmra.mrb[2].mxu0 %vm100_vm2, %v2233_v10 }
  0xf8   :  { %2111 = vmatpush3.msra.mxu0 %v2326_v4  ;;  %2112 = vmatprep.mubr.msk.f32.mxu0 %vm2280_vm0, %v2279_v1 }
  0xf9   :  { %2120 = vmatprep.subr.mxu0 %v2279_v1 }
 0x1c6   :  { %v315_v14 = vpop.f32.mrb[0].mxu0 }
 0x1c7   :  { %v2205_v15 = vadd.f32 %v2363_v13, %v315_v14  ;;  %v2094_v16 = vpop.f32.mrb[1].mxu0 }
 0x1c9   :  { %2234 = vtanh.f32 %v2205_v15 }
 0x1ca   :  { %v463_v18 = vpop.f32.mrb[2].mxu0 }
 0x1cb   :  { %v2104_v19 = vpop.f32.mrb[3].mxu0  ;;  %v467_v20 = vadd.f32 %v463_v18, %v323_v17  ;;  %v89_v18 = vld [vmem:[%s88_s23] sm:$0x1] }
 0x1cc   :  { %v93_v19 = vld [vmem:[%s92_s26] sm:$0x1]  ;;  %90 = vst.msk [vmem:[#allocation2 + $0xe] sm:$0x1] %vm33_vm1, %v89_v18 }
 0x1cd   :  { %2236 = vtanh.f32 %v467_v20  ;;  %94 = vst.msk [vmem:[#allocation2 + $0xf] sm:$0x1] %vm33_vm1, %v93_v19 }
 0x1d3   :  { %v2235_v21 = vpop.eup %2234 }
 0x1d4   :  { %320 = vst.msk [vmem:[#allocation3] sm:$0x1] %vm33_vm1, %v2235_v21  ;;  %2098 = vmatmul.mubr.msk.f32.vlgmr.msra.gmra.mrb[2].mxu1 %vm100_vm2, %v2235_v21 }
 0x1d5   :  { %322 = vst.msk [vmem:[#allocation3 + $0x7] sm:$0x2] %vm321_vm3, %v2235_v21  ;;  %2106 = vmatpush3.msra.mxu1 %v2331_v5  ;;  %2107 = vmatprep.mubr.msk.f32.mxu1 %vm2280_vm0, %v2279_v1 }
 0x1d6   :  { %2115 = vmatprep.subr.mxu1 %v2279_v1 }
 0x1d7   :  { %v2237_v22 = vpop.eup %2236 }
 0x1dc   :  { %2108 = vmatmul.mubr.msk.f32.vlgmr.msra.gmra.mrb[2].mxu1 %vm100_vm2, %v2237_v22 }
 0x1dd   :  { %2116 = vmatpush3.msra.mxu1 %v2302_v0  ;;  %2117 = vmatprep.mubr.msk.f32.mxu1 %vm2280_vm0, %v2279_v1 }
 0x1de   :  { %2125 = vmatprep.subr.mxu1 %v2279_v1 }
 0x1e0   :  { %2118 = vmatmul.mubr.msk.f32.vlgmr.msra.gmra.mrb[4].mxu1 %vm100_vm2, %v2237_v22  ;;  %v1655_v22 = vld [vmem:[#allocation2 + $0xe] sm:$0x3] }
 0x1e1   :  { %2126 = vmatpush3.msra.mxu1 %v2326_v4  ;;  %2127 = vmatprep.mubr.msk.f32.mxu1 %vm2280_vm0, %v2279_v1 }
 0x1e2   :  { %2135 = vmatprep.subr.mxu1 %v2279_v1 }
 0x2af   :  { %v538_v25 = vpop.f32.mrb[2].mxu1 }
 0x2b0   :  { %v2206_v26 = vadd.f32 %v2363_v13, %v538_v25  ;;  %v2109_v27 = vpop.f32.mrb[3].mxu1 }
 0x2b2   :  { %2238 = vtanh.f32 %v2206_v26 }
 0x2b3   :  { %v685_v29 = vpop.f32.mrb[4].mxu1 }
 0x2b4   :  { %v2119_v30 = vpop.f32.mrb[5].mxu1  ;;  %v689_v31 = vadd.f32 %v685_v29, %v545_v28  ;;  %v28_v28 = vld [vmem:[%s2542_s1 + $0x28] sm:$0xff] }
 0x2b6   :  { %2240 = vtanh.f32 %v689_v31 }
 0x2bc   :  { %v2239_v32 = vpop.eup %2238 }
 0x2bd   :  { %543 = vst.msk [vmem:[#allocation3 + $0x1] sm:$0x1] %vm33_vm1, %v2239_v32  ;;  %2113 = vmatmul.mubr.msk.f32.vlgmr.msra.gmra.mrb[4].mxu0 %vm100_vm2, %v2239_v32 }
 0x2be   :  { %544 = vst.msk [vmem:[#allocation3 + $0x8] sm:$0x2] %vm321_vm3, %v2239_v32  ;;  %2121 = vmatpush3.msra.mxu0 %v2331_v5  ;;  %2122 = vmatprep.mubr.msk.f32.mxu0 %vm2280_vm0, %v2279_v1 }
 0x2bf   :  { %2130 = vmatprep.subr.mxu0 %v2279_v1 }
 0x2c0   :  { %v2241_v33 = vpop.eup %2240 }
 0x2c5   :  { %2123 = vmatmul.mubr.msk.f32.vlgmr.msra.gmra.mrb[4].mxu0 %vm100_vm2, %v2241_v33 }
 0x2c6   :  { %2131 = vmatpush3.msra.mxu0 %v2302_v0  ;;  %2132 = vmatprep.mubr.msk.f32.mxu0 %vm2280_vm0, %v2279_v1 }
 0x2c7   :  { %2140 = vmatprep.subr.mxu0 %v2279_v1 }
 0x2c9   :  { %2133 = vmatmul.mubr.msk.f32.vlgmr.msra.gmra.mrb[6].mxu0 %vm100_vm2, %v2241_v33  ;;  %v2026_v33 = vld [vmem:[%s2542_s1 + $0x30] ss:$0 sm:$0xff] }
 0x2ca   :  { %2141 = vmatpush3.msra.mxu0 %v2326_v4  ;;  %2142 = vmatprep.mubr.msk.f32.mxu0 %vm2280_vm0, %v2279_v1 }
 0x2cb   :  { %2150 = vmatprep.subr.mxu0 %v2279_v1 }
 0x398   :  { %v760_v36 = vpop.f32.mrb[4].mxu0 }
 0x399   :  { %v2207_v37 = vadd.f32 %v2363_v13, %v760_v36  ;;  %v2124_v38 = vpop.f32.mrb[5].mxu0 }
 0x39b   :  { %2242 = vtanh.f32 %v2207_v37 }
 0x39c   :  { %v907_v40 = vpop.f32.mrb[6].mxu0 }
 0x39d   :  { %v2134_v41 = vpop.f32.mrb[7].mxu0  ;;  %v911_v42 = vadd.f32 %v907_v40, %v767_v39 }
 0x39f   :  { %2244 = vtanh.f32 %v911_v42 }
 0x3a5   :  { %v2243_v43 = vpop.eup %2242 }
 0x3a6   :  { %765 = vst.msk [vmem:[#allocation3 + $0x2] sm:$0x1] %vm33_vm1, %v2243_v43  ;;  %2128 = vmatmul.mubr.msk.f32.vlgmr.msra.gmra.mrb[6].mxu1 %vm100_vm2, %v2243_v43 }
 0x3a7   :  { %766 = vst.msk [vmem:[#allocation3 + $0x9] sm:$0x2] %vm321_vm3, %v2243_v43  ;;  %2136 = vmatpush3.msra.mxu1 %v2331_v5  ;;  %2137 = vmatprep.mubr.msk.f32.mxu1 %vm2280_vm0, %v2279_v1 }
 0x3a8   :  { %2145 = vmatprep.subr.mxu1 %v2279_v1 }
 0x3a9   :  { %v2245_v44 = vpop.eup %2244 }
 0x3ae   :  { %2138 = vmatmul.mubr.msk.f32.vlgmr.msra.gmra.mrb[6].mxu1 %vm100_vm2, %v2245_v44 }
 0x3af   :  { %2146 = vmatpush3.msra.mxu1 %v2302_v0  ;;  %2147 = vmatprep.mubr.msk.f32.mxu1 %vm2280_vm0, %v2279_v1 }
 0x3b0   :  { %2155 = vmatprep.subr.mxu1 %v2279_v1 }
 0x3b2   :  { %2148 = vmatmul.mubr.msk.f32.vlgmr.msra.gmra.mrb[8].mxu1 %vm100_vm2, %v2245_v44 }
 0x3b3   :  { %2156 = vmatpush3.msra.mxu1 %v2326_v4  ;;  %2157 = vmatprep.mubr.msk.f32.mxu1 %vm2280_vm0, %v2279_v1 }
 0x3b4   :  { %2165 = vmatprep.subr.mxu1 %v2279_v1 }
 0x481   :  { %v982_v47 = vpop.f32.mrb[6].mxu1 }
 0x482   :  { %v2208_v48 = vadd.f32 %v2363_v13, %v982_v47  ;;  %v2139_v49 = vpop.f32.mrb[7].mxu1 }
 0x484   :  { %2246 = vtanh.f32 %v2208_v48 }
 0x485   :  { %v1129_v51 = vpop.f32.mrb[8].mxu1 }
 0x486   :  { %v2149_v52 = vpop.f32.mrb[9].mxu1  ;;  %v1133_v53 = vadd.f32 %v1129_v51, %v989_v50 }
 0x488   :  { %2248 = vtanh.f32 %v1133_v53 }
 0x48e   :  { %v2247_v54 = vpop.eup %2246 }
 0x48f   :  { %987 = vst.msk [vmem:[#allocation3 + $0x3] sm:$0x1] %vm33_vm1, %v2247_v54  ;;  %2143 = vmatmul.mubr.msk.f32.vlgmr.msra.gmra.mrb[8].mxu0 %vm100_vm2, %v2247_v54 }
 0x490   :  { %988 = vst.msk [vmem:[#allocation3 + $0xa] sm:$0x2] %vm321_vm3, %v2247_v54  ;;  %2151 = vmatpush3.msra.mxu0 %v2331_v5  ;;  %2152 = vmatprep.mubr.msk.f32.mxu0 %vm2280_vm0, %v2279_v1 }
 0x491   :  { %2160 = vmatprep.subr.mxu0 %v2279_v1 }
 0x492   :  { %v2249_v55 = vpop.eup %2248 }
 0x497   :  { %2153 = vmatmul.mubr.msk.f32.vlgmr.msra.gmra.mrb[8].mxu0 %vm100_vm2, %v2249_v55 }
 0x498   :  { %2161 = vmatpush3.msra.mxu0 %v2302_v0  ;;  %2162 = vmatprep.mubr.msk.f32.mxu0 %vm2280_vm0, %v2279_v1 }
 0x499   :  { %2170 = vmatprep.subr.mxu0 %v2279_v1 }
 0x49b   :  { %2163 = vmatmul.mubr.msk.f32.vlgmr.msra.gmra.mrb[10].mxu0 %vm100_vm2, %v2249_v55 }
 0x49c   :  { %2171 = vmatpush3.msra.mxu0 %v2326_v4  ;;  %2172 = vmatprep.mubr.msk.f32.mxu0 %vm2280_vm0, %v2279_v1 }
 0x49d   :  { %2180 = vmatprep.subr.mxu0 %v2279_v1 }
 0x56a   :  { %v1204_v58 = vpop.f32.mrb[8].mxu0 }
 0x56b   :  { %v2209_v59 = vadd.f32 %v2363_v13, %v1204_v58  ;;  %v2154_v60 = vpop.f32.mrb[9].mxu0 }
 0x56d   :  { %2250 = vtanh.f32 %v2209_v59 }
 0x56e   :  { %v1351_v62 = vpop.f32.mrb[10].mxu0 }
 0x56f   :  { %v2164_v63 = vpop.f32.mrb[11].mxu0  ;;  %v1355_v2 = vadd.f32 %v1351_v62, %v1211_v61 }
 0x571   :  { %2252 = vtanh.f32 %v1355_v2 }
 0x577   :  { %v2251_v3 = vpop.eup %2250 }
 0x578   :  { %1209 = vst.msk [vmem:[#allocation3 + $0x4] sm:$0x1] %vm33_vm1, %v2251_v3  ;;  %2158 = vmatmul.mubr.msk.f32.vlgmr.msra.gmra.mrb[10].mxu1 %vm100_vm2, %v2251_v3 }
 0x579   :  { %1210 = vst.msk [vmem:[#allocation3 + $0xb] sm:$0x2] %vm321_vm3, %v2251_v3  ;;  %2166 = vmatpush3.msra.mxu1 %v2331_v5  ;;  %2167 = vmatprep.mubr.msk.f32.mxu1 %vm2280_vm0, %v2279_v1 }
 0x57a   :  { %2175 = vmatprep.subr.mxu1 %v2279_v1 }
 0x57b   :  { %v2253_v6 = vpop.eup %2252 }
 0x580   :  { %2168 = vmatmul.mubr.msk.f32.vlgmr.msra.gmra.mrb[10].mxu1 %vm100_vm2, %v2253_v6 }
 0x581   :  { %2176 = vmatpush3.msra.mxu1 %v2302_v0  ;;  %2177 = vmatprep.mubr.msk.f32.mxu1 %vm2280_vm0, %v2279_v1 }
 0x582   :  { %2185 = vmatprep.subr.mxu1 %v2279_v1 }
 0x584   :  { %2178 = vmatmul.mubr.msk.f32.vlgmr.msra.gmra.mrb[12].mxu1 %vm100_vm2, %v2253_v6 }
 0x585   :  { %2186 = vmatpush3.msra.mxu1 %v2326_v4  ;;  %2187 = vmatprep.mubr.msk.f32.mxu1 %vm2280_vm0, %v2279_v1 }
 0x586   :  { %2195 = vmatprep.subr.mxu1 %v2279_v1 }
 0x653   :  { %v1426_v4 = vpop.f32.mrb[10].mxu1 }
 0x654   :  { %v2210_v9 = vadd.f32 %v2363_v13, %v1426_v4  ;;  %v2169_v10 = vpop.f32.mrb[11].mxu1 }
 0x656   :  { %2254 = vtanh.f32 %v2210_v9 }
 0x657   :  { %v1573_v12 = vpop.f32.mrb[12].mxu1 }
 0x658   :  { %v2179_v14 = vpop.f32.mrb[13].mxu1  ;;  %v1577_v15 = vadd.f32 %v1573_v12, %v1433_v11 }
 0x65a   :  { %2256 = vtanh.f32 %v1577_v15 }
 0x660   :  { %v2255_v16 = vpop.eup %2254 }
 0x661   :  { %1431 = vst.msk [vmem:[#allocation3 + $0x5] sm:$0x1] %vm33_vm1, %v2255_v16  ;;  %2173 = vmatmul.mubr.msk.f32.vlgmr.msra.gmra.mrb[12].mxu0 %vm100_vm2, %v2255_v16 }
 0x662   :  { %1432 = vst.msk [vmem:[#allocation3 + $0xc] sm:$0x2] %vm321_vm3, %v2255_v16  ;;  %2181 = vmatpush3.msra.mxu0 %v2331_v5  ;;  %2182 = vmatprep.mubr.msk.f32.mxu0 %vm2280_vm0, %v2279_v1 }
 0x663   :  { %2190 = vmatprep.subr.mxu0 %v2279_v1 }
 0x664   :  { %v2257_v17 = vpop.eup %2256 }
 0x669   :  { %2183 = vmatmul.mubr.msk.f32.vlgmr.msra.gmra.mrb[12].mxu0 %vm100_vm2, %v2257_v17 }
 0x66a   :  { %2191 = vmatpush3.msra.mxu0 %v2302_v0  ;;  %2192 = vmatprep.mubr.msk.f32.mxu0 %vm2280_vm0, %v2279_v1 }
 0x66b   :  { %2200 = vmatprep.subr.mxu0 %v28_v28 }
 0x66d   :  { %2193 = vmatmul.mubr.msk.f32.vlgmr.msra.gmra.mrb[14].mxu0 %vm100_vm2, %v2257_v17 }
 0x66e   :  { %2201 = vmatpush3.msra.mxu0 %v28_v28 }
 0x73c   :  { %v1648_v0 = vpop.f32.mrb[12].mxu0 }
 0x73d   :  { %v2211_v20 = vadd.f32 %v2363_v13, %v1648_v0  ;;  %v2184_v21 = vpop.f32.mrb[13].mxu0 }
 0x73f   :  { %2258 = vtanh.f32 %v2211_v20 }
 0x740   :  { %v1795_v23 = vpop.f32.mrb[14].mxu0 }
 0x741   :  { %v2194_v24 = vpop.f32.mrb[15].mxu0  ;;  %v1799_v25 = vadd.f32 %v1795_v23, %v1655_v22 }
 0x743   :  { %2260 = vtanh.f32 %v1799_v25 }
 0x749   :  { %v2259_v26 = vpop.eup %2258 }
 0x74a   :  { %1653 = vst.msk [vmem:[#allocation3 + $0x6] sm:$0x1] %vm33_vm1, %v2259_v26  ;;  %2188 = vmatmul.mubr.msk.f32.vlgmr.msra.gmra.mrb[14].mxu1 %vm100_vm2, %v2259_v26 }
 0x74b   :  { %1654 = vst.msk [vmem:[#allocation3 + $0xd] sm:$0x2] %vm321_vm3, %v2259_v26  ;;  %2196 = vmatpush3.msra.mxu1 %v2331_v5  ;;  %2197 = vmatprep.mubr.msk.f32.mxu1 %vm2280_vm0, %v2279_v1 }
 0x74d   :  { %v2261_v27 = vpop.eup %2260 }
 0x752   :  { %2198 = vmatmul.mubr.msk.f32.vlgmr.msra.gmra.mrb[14].mxu1 %vm100_vm2, %v2261_v27 }
 0x825   :  { %v1870_v29 = vpop.f32.mrb[14].mxu1 }
 0x826   :  { %v2212_v30 = vadd.f32 %v2363_v13, %v1870_v29  ;;  %v2199_v31 = vpop.f32.mrb[15].mxu1 }
 0x828   :  { %2262 = vtanh.f32 %v2212_v30 }
 0x832   :  { %v2263_v32 = vpop.eup %2262 }
 0x833   :  { %1875 = vst.msk [vmem:[#allocation3 + $0x7] sm:$0x1] %vm33_vm1, %v2263_v32 }
 0x834   :  { %1876 = vst.msk [vmem:[#allocation3 + $0xe] sm:$0x2] %vm321_vm3, %v2263_v32 }
 0x83a   :  { %v1877_v1 = vld [vmem:[#allocation3] sm:$0xff] }
 0x83b   :  { %v1878_v5 = vld [vmem:[#allocation3 + $0x8] sm:$0xff]  ;;  %2202 = vmatprep.mubr.msk.f32.mxu0 %vm100_vm2, %v1877_v1 }
 0x83c   :  { %2203 = vmatmul.mubr.msk.f32.vlgmr.msra.gmra.mrb[16].mxu0 %vm100_vm2, %v1878_v5 }
 0x90f   :  { %v2204_v34 = vpop.f32.mrb[16].mxu0 }
 0x910   :  { %v1961_v13 = vadd.f32 %v2204_v34, %v2026_v33  ;;  %v1955_v35 = vpop.f32.mrb[17].mxu0 }
 0x911   :  { %v1956_v36 = vadd.f32 %v2026_v33, %v1955_v35 }
 0x912   :  { %1966 = vst.msk [vmem:[%s2543_s2 + $0x8] sm:$0xff] %vm1964_vm4, %v1961_v13 }
 0x913   :  { %1965 = vst.msk [vmem:[%s2543_s2] sm:$0xff] %vm1964_vm4, %v1956_v36 }
 0x914   :  { %1971 = vsyncpa [#allocation5], 1 }

</bundles_post_ra>
